<compile_context>
chip_gen: v7x
topology: tpu7x:2x2x1
jax: 0.10.0
libtpu: 0.0.40
codegen_flags: <defaults>
</compile_context>

<pallas_src>
import math

import jax
import jax.numpy as jnp
from jax.experimental import pallas as pl
from jax.experimental.pallas import tpu as pltpu

_LANE = 128                          # vreg lane width
_SUBLANE_F32 = 8                     # vreg sublane count for 32-bit dtypes
_MAX_TILE_BYTES = 4 * 1024 * 1024    # ~4 MiB per tile (4x double-buffered working set ~16 MiB)
_MIN_TILE_BYTES = 512 * 1024         # smallest tile we accept to elide padding
_VMEM_HEADROOM = 2 * 1024 * 1024     # param row + descriptors + compiler scratch


def _add_param_kernel(x_ref, p_ref, o_ref):
    # x_ref: (rows_per_tile, W) lane-dense tile; p_ref: (1, W) resident param row.
    # Pure VPU elementwise add with sublane broadcast; full-width unmasked stores.
    o_ref[...] = x_ref[...] + p_ref[...]


def _choose_rows_per_tile(n_rows_aligned, bytes_per_row, sublane, prefer_divisor):
    """Pick a sublane-aligned tile row count <= _MAX_TILE_BYTES worth of data."""
    max_rows = max(sublane, (_MAX_TILE_BYTES // bytes_per_row) // sublane * sublane)
    if n_rows_aligned <= max_rows:
        return n_rows_aligned, max_rows
    if prefer_divisor:
        # Largest multiple-of-sublane divisor of n_rows_aligned that still gives
        # a reasonably sized tile: lets us skip the pad/slice HBM pass entirely.
        min_rows = max(sublane, (_MIN_TILE_BYTES // bytes_per_row) // sublane * sublane)
        for cand in range(max_rows, min_rows - 1, -sublane):
            if n_rows_aligned % cand == 0:
                return cand, max_rows
    return max_rows, max_rows


def example_model_forward(x, param):
    """ExampleModel.forward: returns x + param (param broadcasts over the last dim)."""
    feat = param.shape[0]
    assert x.shape[-1] == feat, "last dim of x must match param length"
    orig_shape = x.shape
    dtype = x.dtype
    itemsize = dtype.itemsize
    n = x.size

    # Packed-tiling sublane alignment: 8 rows for 4-byte, 16 for 2-byte, 32 for 1-byte.
    sublane = max(_SUBLANE_F32, 32 // max(1, itemsize))

    # Lane-dense width: multiple of 128 (unmasked stores) AND multiple of F, so the
    # broadcast param is the same (1, W) row for every tile.
    lane_width = (feat * _LANE) // math.gcd(feat, _LANE)   # lcm(F, 128); 640 for F=10
    if lane_width * itemsize > _MAX_TILE_BYTES:
        # Guard for very large feature dims: feat-wide layout (masked stores) instead
        # of letting lcm(F, 128) blow past the VMEM budget.
        width = feat
    else:
        width = lane_width
    reps = width // feat
    p_row = jnp.tile(param.astype(dtype), reps).reshape(1, width)

    bytes_per_row = width * itemsize
    n_rows = -(-n // width)
    n_rows_aligned = -(-n_rows // sublane) * sublane
    pad_could_be_elided = (n == n_rows * width) and (n_rows == n_rows_aligned)

    rows_per_tile, _ = _choose_rows_per_tile(
        n_rows_aligned, bytes_per_row, sublane, prefer_divisor=pad_could_be_elided)
    padded_rows = -(-n_rows_aligned // rows_per_tile) * rows_per_tile
    grid = (padded_rows // rows_per_tile,)

    aligned = padded_rows * width == n
    if aligned:
        # Fast path: no pad, no trailing slice, and no aliasing (the slab is just a
        # reshape of the caller's x; aliasing it would force a defensive copy).
        x_slab = x.reshape(padded_rows, width)
        io_alias = {}
    else:
        x_slab = jnp.pad(x.reshape(-1), (0, padded_rows * width - n)).reshape(
            padded_rows, width)
        io_alias = {0: 0}   # slab is a fresh intermediate -> reuse its HBM buffer

    tile_bytes = rows_per_tile * bytes_per_row
    vmem_limit = int(max(16 << 20, min(4 * tile_bytes + _VMEM_HEADROOM, 48 << 20)))

    cost = pl.CostEstimate(
        flops=padded_rows * width,
        transcendentals=0,
        bytes_accessed=2 * padded_rows * width * itemsize + width * itemsize,
    )

    out_slab = pl.pallas_call(
        _add_param_kernel,
        out_shape=jax.ShapeDtypeStruct((padded_rows, width), dtype),
        grid=grid,
        in_specs=[
            pl.BlockSpec((rows_per_tile, width), lambda i: (i, 0)),
            pl.BlockSpec((1, width), lambda i: (0, 0)),   # param: DMA'd once, stays resident
        ],
        out_specs=pl.BlockSpec((rows_per_tile, width), lambda i: (i, 0)),
        input_output_aliases=io_alias,
        compiler_params=pltpu.CompilerParams(
            dimension_semantics=("parallel",),
            vmem_limit_bytes=vmem_limit,
        ),
        cost_estimate=cost,
    )(x_slab, p_row)

    if aligned:
        return out_slab.reshape(orig_shape)
    return out_slab.reshape(-1)[:n].reshape(orig_shape)


if __name__ == "__main__":
    key = jax.random.PRNGKey(0)
    k_param, k_x, k_x2 = jax.random.split(key, 3)

    # Matches torch.rand(10): uniform [0, 1), shape (10,)
    param = jax.random.uniform(k_param, (10,), dtype=jnp.float32)

    forward = jax.jit(example_model_forward)

    # Path 1: small unaligned input (exercises pad + alias path): (batch=2, seq=8, feat=10)
    x = jax.random.normal(k_x, (2, 8, 10), dtype=jnp.float32)
    out = jax.block_until_ready(forward(x, param))
    ref = x + param.reshape(1, 1, 10)
    assert out.shape == x.shape and out.dtype == x.dtype
    assert jnp.allclose(out, ref, atol=1e-6), "mismatch vs reference (padded path)"

    # Path 2: width-aligned input (exercises the no-pad / no-alias fast path)
    x2 = jax.random.normal(k_x2, (64, 8, 10), dtype=jnp.float32)
    out2 = jax.block_until_ready(forward(x2, param))
    ref2 = x2 + param.reshape(1, 1, 10)
    assert out2.shape == x2.shape and out2.dtype == x2.dtype
    assert jnp.allclose(out2, ref2, atol=1e-6), "mismatch vs reference (aligned path)"

    print("KERNEL_OK")
</pallas_src>

<mosaic_0001>
module attributes {stable_mosaic.version = 11 : i64} {
  func.func @_add_param_kernel(%arg0: i32, %arg1: memref<8x640xf32, #tpu.memory_space<vmem>>, %arg2: memref<1x640xf32, #tpu.memory_space<vmem>>, %arg3: memref<8x640xf32, #tpu.memory_space<vmem>>) attributes {dimension_semantics = [#tpu.dimension_semantics<parallel>], iteration_bounds = array<i64: 1>, scalar_prefetch = 0 : i64, scratch_operands = 0 : i64, tpu.core_type = #tpu.core_type<tc>, window_params = [{transform_indices = @transform_0, window_bounds = array<i64: 8, 640>}, {pipeline_mode = #tpu.pipeline_mode<synchronous>, transform_indices = @transform_1, window_bounds = array<i64: 1, 640>}, {transform_indices = @transform_2, window_bounds = array<i64: 8, 640>}]} {
    %c0 = arith.constant 0 : index
    %c0_0 = arith.constant 0 : index
    %0 = vector.load %arg1[%c0, %c0_0] : memref<8x640xf32, #tpu.memory_space<vmem>>, vector<8x640xf32>
    %c0_1 = arith.constant 0 : index
    %c0_2 = arith.constant 0 : index
    %1 = vector.load %arg2[%c0_1, %c0_2] : memref<1x640xf32, #tpu.memory_space<vmem>>, vector<1x640xf32>
    %2 = vector.broadcast %1 : vector<1x640xf32> to vector<8x640xf32>
    %3 = arith.addf %0, %2 : vector<8x640xf32>
    %c0_3 = arith.constant 0 : index
    %c0_4 = arith.constant 0 : index
    %4 = vector.load %arg3[%c0_3, %c0_4] : memref<8x640xf32, #tpu.memory_space<vmem>>, vector<8x640xf32>
    tpu.vector_store %arg3[%c0_3, %c0_4], %3 {strides = array<i32>} : memref<8x640xf32, #tpu.memory_space<vmem>>, vector<8x640xf32>,
    return
  }
  func.func @transform_0(%arg0: i32) -> (i32, i32) {
    %c0_i32 = arith.constant 0 : i32
    %c0_i32_0 = arith.constant 0 : i32
    return %arg0, %c0_i32 : i32, i32
  }
  func.func @transform_1(%arg0: i32) -> (i32, i32) {
    %c0_i32 = arith.constant 0 : i32
    %c0_i32_0 = arith.constant 0 : i32
    %c0_i32_1 = arith.constant 0 : i32
    return %c0_i32, %c0_i32_0 : i32, i32
  }
  func.func @transform_2(%arg0: i32) -> (i32, i32) {
    %c0_i32 = arith.constant 0 : i32
    %c0_i32_0 = arith.constant 0 : i32
    return %arg0, %c0_i32 : i32, i32
  }
}

</mosaic_0001>

<bundles_post_ra>
// kernel: tile.8
= control target key start
LH: loop header
LB: loop body
LE: loop exit
PB: predicated region body
PF: predicated region fallthrough
CT: control target
= control target key end

     0   :  { %s64_s0 = inlined_call_operand.vmem [shape: f32[10], index: 0, kind: input, shape index: {}]   ;;  %s65_s1 = inlined_call_operand.vmem [shape: f32[64,10], index: 1, kind: output, shape index: {}]  }
   0x1   :  { %v4_v0 = vld [vmem:[%s64_s0] ss:$0 sm:$0xff] }
   0x2   :  { %5 = vst [vmem:[%s65_s1] sm:$0xff] %v4_v0  ;;  %20 = vst [vmem:[%s65_s1 + $0x8] sm:$0xff] %v4_v0 }
   0x3   :  { %21 = vst [vmem:[%s65_s1 + $0x10] sm:$0xff] %v4_v0  ;;  %22 = vst [vmem:[%s65_s1 + $0x18] sm:$0xff] %v4_v0 }
   0x4   :  { %23 = vst [vmem:[%s65_s1 + $0x20] sm:$0xff] %v4_v0  ;;  %24 = vst [vmem:[%s65_s1 + $0x28] sm:$0xff] %v4_v0 }
   0x5   :  { %25 = vst [vmem:[%s65_s1 + $0x30] sm:$0xff] %v4_v0  ;;  %26 = vst [vmem:[%s65_s1 + $0x38] sm:$0xff] %v4_v0 }

// kernel: tile.9
= control target key start
LH: loop header
LB: loop body
LE: loop exit
PB: predicated region body
PF: predicated region fallthrough
CT: control target
= control target key end

     0   :  { %vm9_vm0 = vcmask 15360   ;;  %vm27_vm1 = vcmask 48128   ;;  %s628_s14 = smov 126   ;;  %vm23_vm2 = vcmask 31744   ;;  %s629_s19 = smov 122   ;;  %vm13_vm3 = vcmask 64512   ;;  %s928_s0 = inlined_call_operand.vmem [shape: f32[64,10], index: 0, kind: input, shape index: {}]   ;;  %s929_s1 = inlined_call_operand.vmem [shape: f32[1,640], index: 1, kind: output, shape index: {}]  }
   0x1   :  { %v494_v0 = vld [vmem:[%s928_s0 + $0x33] sm:$0x1]   ;;  %v498_v3 = vld [vmem:[%s928_s0 + $0x19] sm:$0x1]   ;;  %v496_v6 = vld [vmem:[%s928_s0 + $0x26] sm:$0x1]  }
   0x2   :  { %v495_v1 = vld [vmem:[%s928_s0 + $0x33] sm:$0x1]   ;;  %v499_v4 = vld [vmem:[%s928_s0 + $0x19] sm:$0x1]   ;;  %v497_v7 = vld [vmem:[%s928_s0 + $0x26] sm:$0x1]  }
   0x3   :  { %v10_v2 = vsel %vm9_vm0, %v495_v1, %v494_v0  ;;  %v38_v5 = vsel %vm27_vm1, %v499_v4, %v498_v3  ;;  %v24_v8 = vsel %vm23_vm2, %v497_v7, %v496_v6  ;;  %v500_v9 = vld [vmem:[%s928_s0 + $0xc] sm:$0x1]   ;;  %s630_s24 = smov 124   ;;  %s631_s25 = smov 120   ;;  %v502_v12 = vld [vmem:[%s928_s0 + $0x3f] sm:$0x1]  }
   0x4   :  { %11 = vrot.lane.b32.xlu0 %v10_v2, %s628_s14  ;;  %39 = vrot.lane.b32.xlu1 %v38_v5, %s629_s19  ;;  %v501_v10 = vld [vmem:[%s928_s0 + $0xc] sm:$0x1]   ;;  %v503_v13 = vld [vmem:[%s928_s0 + $0x32] sm:$0x1]   ;;  %s632_s30 = smov 118   ;;  %s633_s2 = smov 116  }
   0x5   :  { %v52_v11 = vsel %vm13_vm3, %v501_v10, %v500_v9  ;;  %v504_v14 = vld [vmem:[%s928_s0 + $0x25] sm:$0x1]   ;;  %v505_v15 = vld [vmem:[%s928_s0 + $0x18] sm:$0x1]   ;;  %s634_s7 = smov 114   ;;  %s635_s8 = smov 112  }
   0x6   :  { %v506_v16 = vld [vmem:[%s928_s0 + $0xb] sm:$0x1]   ;;  %v507_v17 = vld [vmem:[%s928_s0 + $0x3e] sm:$0x1]   ;;  %s636_s13 = smov 110   ;;  %s637_s14 = smov 108  }
   0x7   :  { %v508_v18 = vld [vmem:[%s928_s0 + $0x31] sm:$0x1]   ;;  %v509_v19 = vld [vmem:[%s928_s0 + $0x24] sm:$0x1]   ;;  %s638_s19 = smov 106   ;;  %s639_s20 = smov 104  }
   0x8   :  { %25 = vrot.lane.b32.xlu0 %v24_v8, %s630_s24  ;;  %53 = vrot.lane.b32.xlu1 %v52_v11, %s631_s25  ;;  %v510_v20 = vld [vmem:[%s928_s0 + $0x17] sm:$0x1]   ;;  %v511_v21 = vld [vmem:[%s928_s0 + $0xa] sm:$0x1]   ;;  %s640_s25 = smov 102   ;;  %s641_s26 = smov 100  }
   0x9   :  { %v512_v22 = vld [vmem:[%s928_s0 + $0x3d] sm:$0x1]   ;;  %v513_v23 = vld [vmem:[%s928_s0 + $0x30] sm:$0x1]   ;;  %s643_s3 = smov 96   ;;  %vm3_vm4 = vcmask 80896  }
   0xa   :  { %v514_v24 = vld [vmem:[%s928_s0 + $0x23] sm:$0x1]   ;;  %v515_v25 = vld [vmem:[%s928_s0 + $0x16] sm:$0x1]   ;;  %v2_v26 = vld [vmem:[%s928_s0] sm:$0x1]  }
   0xb   :  { %s644_s10 = smov 94   ;;  %4 = vst.msk [vmem:[#allocation0] sm:$0x1] %vm3_vm4, %v2_v26   ;;  %s645_s11 = smov 92   ;;  %v516_v27 = vld [vmem:[%s928_s0 + $0x9] sm:$0x1]  }
   0xc   :  { %62 = vrot.lane.b32.xlu0 %v502_v12, %s632_s30  ;;  %69 = vrot.lane.b32.xlu1 %v503_v13, %s633_s2  ;;  %s642_s2 = smov 98   ;;  %v517_v28 = vld [vmem:[%s928_s0 + $0x3c] sm:$0x1]   ;;  %s646_s16 = smov 90   ;;  %v518_v29 = vld [vmem:[%s928_s0 + $0x2f] sm:$0x1]  }
   0xd   :  { %s647_s17 = smov 88   ;;  %v519_v30 = vld [vmem:[%s928_s0 + $0x22] sm:$0x1]   ;;  %s648_s22 = smov 86   ;;  %v520_v31 = vld [vmem:[%s928_s0 + $0x15] sm:$0x1]  }
   0xe   :  { %s649_s23 = smov 84   ;;  %v521_v32 = vld [vmem:[%s928_s0 + $0x8] sm:$0x1]   ;;  %s650_s28 = smov 82   ;;  %v522_v33 = vld [vmem:[%s928_s0 + $0x3b] sm:$0x1]  }
   0xf   :  { %s651_s29 = smov 80   ;;  %v523_v34 = vld [vmem:[%s928_s0 + $0x2e] sm:$0x1]   ;;  %s652_s5 = smov 78   ;;  %v524_v35 = vld [vmem:[%s928_s0 + $0x21] sm:$0x1]  }
  0x10   :  { %76 = vrot.lane.b32.xlu0 %v504_v14, %s634_s7  ;;  %83 = vrot.lane.b32.xlu1 %v505_v15, %s635_s8  ;;  %s653_s6 = smov 76   ;;  %v525_v36 = vld [vmem:[%s928_s0 + $0x14] sm:$0x1]   ;;  %s655_s12 = smov 72   ;;  %v526_v37 = vld [vmem:[%s928_s0 + $0x7] sm:$0x1]  }
  0x11   :  { %v527_v38 = vld [vmem:[%s928_s0 + $0x3a] sm:$0x1]   ;;  %s657_s18 = smov 68   ;;  %v528_v39 = vld [vmem:[%s928_s0 + $0x2d] sm:$0x1]   ;;  %s659_s24 = smov 64  }
  0x12   :  { %v529_v40 = vld [vmem:[%s928_s0 + $0x20] sm:$0x1]   ;;  %v530_v41 = vld [vmem:[%s928_s0 + $0x13] sm:$0x1]   ;;  %v531_v42 = vld [vmem:[%s928_s0 + $0x6] sm:$0x1]  }
  0x13   :  { %s661_s30 = smov 60   ;;  %v532_v43 = vld [vmem:[%s928_s0 + $0x39] sm:$0x1]   ;;  %v533_v44 = vld [vmem:[%s928_s0 + $0x2c] sm:$0x1]   ;;  %s663_s7 = smov 56  }
  0x14   :  { %90 = vrot.lane.b32.xlu0 %v506_v16, %s636_s13  ;;  %96 = vrot.lane.b32.xlu1 %v507_v17, %s637_s14  ;;  %v534_v45 = vld [vmem:[%s928_s0 + $0x1f] sm:$0x1]   ;;  %v535_v46 = vld [vmem:[%s928_s0 + $0x12] sm:$0x1]   ;;  %s665_s13 = smov 52   ;;  %s673_s8 = smov 36  }
  0x15   :  { %v536_v47 = vld [vmem:[%s928_s0 + $0x5] sm:$0x1]   ;;  %v537_v48 = vld [vmem:[%s928_s0 + $0x38] sm:$0x1]   ;;  %v538_v49 = vld [vmem:[%s928_s0 + $0x2b] sm:$0x1]  }
  0x16   :  { %v539_v50 = vld [vmem:[%s928_s0 + $0x1e] sm:$0x1]   ;;  %v540_v51 = vld [vmem:[%s928_s0 + $0x11] sm:$0x1]   ;;  %v541_v52 = vld [vmem:[%s928_s0 + $0x4] sm:$0x1]  }
  0x17   :  { %v542_v53 = vld [vmem:[%s928_s0 + $0x37] sm:$0x1]   ;;  %v543_v54 = vld [vmem:[%s928_s0 + $0x2a] sm:$0x1]   ;;  %v544_v55 = vld [vmem:[%s928_s0 + $0x1d] sm:$0x1]  }
  0x18   :  { %103 = vrot.lane.b32.xlu0 %v508_v18, %s638_s19  ;;  %110 = vrot.lane.b32.xlu1 %v509_v19, %s639_s20  ;;  %s667_s19 = smov 48   ;;  %v545_v56 = vld [vmem:[%s928_s0 + $0x10] sm:$0x1]   ;;  %s675_s14 = smov 32   ;;  %v546_v57 = vld [vmem:[%s928_s0 + $0x3] sm:$0x1]  }
  0x19   :  { %v547_v58 = vld [vmem:[%s928_s0 + $0x36] sm:$0x1]   ;;  %s677_s20 = smov 28   ;;  %v548_v59 = vld [vmem:[%s928_s0 + $0x29] sm:$0x1]   ;;  %s683_s9 = smov 16  }
  0x1a   :  { %v549_v60 = vld [vmem:[%s928_s0 + $0x1c] sm:$0x1]   ;;  %v550_v61 = vld [vmem:[%s928_s0 + $0xf] sm:$0x1]   ;;  %v551_v62 = vld [vmem:[%s928_s0 + $0x2] sm:$0x1]  }
  0x1b   :  { %v552_v63 = vld [vmem:[%s928_s0 + $0x35] sm:$0x1]   ;;  %v553_v0 = vld [vmem:[%s928_s0 + $0x28] sm:$0x1]   ;;  %v554_v1 = vld [vmem:[%s928_s0 + $0x1b] sm:$0x1]  }
  0x1c   :  { %117 = vrot.lane.b32.xlu0 %v510_v20, %s640_s25  ;;  %124 = vrot.lane.b32.xlu1 %v511_v21, %s641_s26  ;;  %s669_s25 = smov 44   ;;  %s679_s26 = smov 24   ;;  %v555_v2 = vld [vmem:[%s928_s0 + $0xe] sm:$0x1]   ;;  %vm16_vm5 = vcmask 1048560   ;;  %vm44_vm6 = vcmask 1048528  }
  0x1d   :  { %s685_s15 = smov 12   ;;  %v556_v3 = vld [vmem:[%s928_s0 + $0x1] sm:$0x1]   ;;  %v557_v5 = vld [vmem:[%s928_s0 + $0x34] sm:$0x1]   ;;  %vm30_vm7 = vcmask 1048544  }
  0x1e   :  { %s687_s21 = smov 8   ;;  %v558_v7 = vld [vmem:[%s928_s0 + $0x27] sm:$0x1]   ;;  %vm58_vm8 = vcmask 1048512   ;;  %v559_v9 = vld [vmem:[%s928_s0 + $0x1a] sm:$0x1]  }
  0x1f   :  { %vm64_vm9 = vcmask 1048496   ;;  %s689_s27 = smov 4   ;;  %v560_v11 = vld [vmem:[%s928_s0 + $0xd] sm:$0x1]   ;;  %vm71_vm10 = vcmask 1032096   ;;  %s690_s0 = smov 2  }
  0x20   :  { %130 = vrot.lane.b32.xlu0 %v512_v22, %s642_s2  ;;  %137 = vrot.lane.b32.xlu1 %v513_v23, %s643_s3  ;;  %s671_s2 = smov 40   ;;  %s681_s3 = smov 20   ;;  %vm78_vm11 = vcmask 1015696   ;;  %vm85_vm12 = vcmask 999296   ;;  %vm92_vm13 = vcmask 982896   ;;  %vm98_vm14 = vcmask 966496  }
  0x21   :  { %vm105_vm15 = vcmask 950096   ;;  %vm139_vm4 = vcmask 868096  }
  0x24   :  { %144 = vrot.lane.b32.xlu0 %v514_v24, %s644_s10  ;;  %151 = vrot.lane.b32.xlu1 %v515_v25, %s645_s11  ;;  %s654_s11 = smov 74  }
  0x28   :  { %158 = vrot.lane.b32.xlu0 %v516_v27, %s646_s16  ;;  %164 = vrot.lane.b32.xlu1 %v517_v28, %s647_s17  ;;  %s656_s17 = smov 70  }
  0x2c   :  { %171 = vrot.lane.b32.xlu0 %v518_v29, %s648_s22  ;;  %178 = vrot.lane.b32.xlu1 %v519_v30, %s649_s23  ;;  %s658_s23 = smov 66  }
  0x30   :  { %185 = vrot.lane.b32.xlu0 %v520_v31, %s650_s28  ;;  %192 = vrot.lane.b32.xlu1 %v521_v32, %s651_s29  ;;  %s660_s29 = smov 62  }
  0x34   :  { %198 = vrot.lane.b32.xlu0 %v522_v33, %s652_s5  ;;  %205 = vrot.lane.b32.xlu1 %v523_v34, %s653_s6  ;;  %s662_s6 = smov 58  }
  0x38   :  { %212 = vrot.lane.b32.xlu0 %v524_v35, %s654_s11  ;;  %219 = vrot.lane.b32.xlu1 %v525_v36, %s655_s12  ;;  %s664_s12 = smov 54  }
  0x3c   :  { %226 = vrot.lane.b32.xlu0 %v526_v37, %s656_s17  ;;  %232 = vrot.lane.b32.xlu1 %v527_v38, %s657_s18  ;;  %s666_s18 = smov 50  }
  0x40   :  { %239 = vrot.lane.b32.xlu0 %v528_v39, %s658_s23  ;;  %246 = vrot.lane.b32.xlu1 %v529_v40, %s659_s24  ;;  %s668_s24 = smov 46  }
  0x44   :  { %253 = vrot.lane.b32.xlu0 %v530_v41, %s660_s29  ;;  %260 = vrot.lane.b32.xlu1 %v531_v42, %s661_s30  ;;  %s670_s30 = smov 42  }
  0x48   :  { %266 = vrot.lane.b32.xlu0 %v532_v43, %s662_s6  ;;  %273 = vrot.lane.b32.xlu1 %v533_v44, %s663_s7  ;;  %s672_s7 = smov 38  }
  0x4c   :  { %280 = vrot.lane.b32.xlu0 %v534_v45, %s664_s12  ;;  %287 = vrot.lane.b32.xlu1 %v535_v46, %s665_s13  ;;  %s674_s13 = smov 34  }
  0x50   :  { %294 = vrot.lane.b32.xlu0 %v536_v47, %s666_s18  ;;  %300 = vrot.lane.b32.xlu1 %v537_v48, %s667_s19  ;;  %s676_s19 = smov 30  }
  0x54   :  { %307 = vrot.lane.b32.xlu0 %v538_v49, %s668_s24  ;;  %314 = vrot.lane.b32.xlu1 %v539_v50, %s669_s25  ;;  %s678_s25 = smov 26  }
  0x58   :  { %321 = vrot.lane.b32.xlu0 %v540_v51, %s670_s30  ;;  %328 = vrot.lane.b32.xlu1 %v541_v52, %s671_s2  ;;  %s680_s2 = smov 22  }
  0x5c   :  { %334 = vrot.lane.b32.xlu0 %v542_v53, %s672_s7  ;;  %341 = vrot.lane.b32.xlu1 %v543_v54, %s673_s8  ;;  %s682_s8 = smov 18  }
  0x60   :  { %348 = vrot.lane.b32.xlu0 %v544_v55, %s674_s13  ;;  %355 = vrot.lane.b32.xlu1 %v545_v56, %s675_s14  ;;  %s684_s14 = smov 14  }
  0x64   :  { %362 = vrot.lane.b32.xlu0 %v546_v57, %s676_s19  ;;  %368 = vrot.lane.b32.xlu1 %v547_v58, %s677_s20  ;;  %s686_s20 = smov 10  }
  0x68   :  { %375 = vrot.lane.b32.xlu0 %v548_v59, %s678_s25  ;;  %382 = vrot.lane.b32.xlu1 %v549_v60, %s679_s26  ;;  %s688_s26 = smov 6  }
  0x6c   :  { %389 = vrot.lane.b32.xlu0 %v550_v61, %s680_s2  ;;  %396 = vrot.lane.b32.xlu1 %v551_v62, %s681_s3 }
  0x70   :  { %402 = vrot.lane.b32.xlu0 %v552_v63, %s682_s8  ;;  %409 = vrot.lane.b32.xlu1 %v553_v0, %s683_s9 }
  0x74   :  { %416 = vrot.lane.b32.xlu0 %v554_v1, %s684_s14  ;;  %423 = vrot.lane.b32.xlu1 %v555_v2, %s685_s15 }
  0x76   :  { %v12_v4 = vpop.permute.xlu0 %11   ;;  %v40_v6 = vpop.permute.xlu1 %39  }
  0x77   :  { %15 = vst.msk [vmem:[#allocation0 + $0x20] sm:$0x1] %vm13_vm3, %v12_v4   ;;  %vm132_vm3 = vcmask 884496  }
  0x78   :  { %18 = vst.msk [vmem:[#allocation0 + $0x18] sm:$0x1] %vm16_vm5, %v12_v4   ;;  %430 = vrot.lane.b32.xlu0 %v556_v3, %s686_s20  ;;  %436 = vrot.lane.b32.xlu1 %v557_v5, %s687_s21  ;;  %vm146_vm5 = vcmask 851696  }
  0x79   :  { %46 = vst.msk [vmem:[#allocation0 + $0x8] sm:$0x1] %vm44_vm6, %v40_v6   ;;  %vm153_vm6 = vcmask 835296  }
  0x7a   :  { %v26_v8 = vpop.permute.xlu0 %25   ;;  %v54_v10 = vpop.permute.xlu1 %53  }
  0x7b   :  { %29 = vst.msk [vmem:[#allocation0 + $0x18] sm:$0x1] %vm27_vm1, %v26_v8   ;;  %vm119_vm1 = vcmask 917296  }
  0x7c   :  { %32 = vst.msk [vmem:[#allocation0 + $0x10] sm:$0x1] %vm30_vm7, %v26_v8   ;;  %443 = vrot.lane.b32.xlu0 %v558_v7, %s688_s26  ;;  %450 = vrot.lane.b32.xlu1 %v559_v9, %s689_s27  ;;  %vm160_vm7 = vcmask 818896  }
  0x7d   :  { %43 = vst.msk [vmem:[#allocation0 + $0x10] sm:$0x1] %vm23_vm2, %v40_v6   ;;  %vm126_vm2 = vcmask 900896  }
  0x7e   :  { %57 = vst.msk [vmem:[#allocation0 + $0x8] sm:$0x1] %vm9_vm0, %v54_v10   ;;  %v63_v12 = vpop.permute.xlu0 %62   ;;  %v70_v13 = vpop.permute.xlu1 %69   ;;  %vm112_vm0 = vcmask 933696  }
  0x7f   :  { %59 = vst.msk [vmem:[#allocation0] sm:$0x1] %vm58_vm8, %v54_v10   ;;  %vm166_vm8 = vcmask 802496  }
  0x80   :  { %66 = vst.msk [vmem:[#allocation0 + $0x20] sm:$0x1] %vm64_vm9, %v63_v12   ;;  %457 = vrot.lane.b32.xlu0 %v560_v11, %s690_s0  ;;  %vm173_vm9 = vcmask 786096  }
  0x81   :  { %73 = vst.msk [vmem:[#allocation0 + $0x18] sm:$0x1] %vm71_vm10, %v70_v13   ;;  %vm180_vm10 = vcmask 769696  }
  0x82   :  { %v77_v14 = vpop.permute.xlu0 %76   ;;  %v84_v15 = vpop.permute.xlu1 %83  }
  0x83   :  { %80 = vst.msk [vmem:[#allocation0 + $0x10] sm:$0x1] %vm78_vm11, %v77_v14   ;;  %vm187_vm11 = vcmask 753296  }
  0x84   :  { %87 = vst.msk [vmem:[#allocation0 + $0x8] sm:$0x1] %vm85_vm12, %v84_v15   ;;  %vm194_vm12 = vcmask 736896  }
  0x86   :  { %v91_v16 = vpop.permute.xlu0 %90   ;;  %v97_v17 = vpop.permute.xlu1 %96  }
  0x87   :  { %93 = vst.msk [vmem:[#allocation0] sm:$0x1] %vm92_vm13, %v91_v16   ;;  %vm200_vm13 = vcmask 720496  }
  0x88   :  { %100 = vst.msk [vmem:[#allocation0 + $0x20] sm:$0x1] %vm98_vm14, %v97_v17   ;;  %vm207_vm14 = vcmask 704096  }
  0x8a   :  { %v104_v18 = vpop.permute.xlu0 %103   ;;  %v111_v19 = vpop.permute.xlu1 %110  }
  0x8b   :  { %107 = vst.msk [vmem:[#allocation0 + $0x18] sm:$0x1] %vm105_vm15, %v104_v18   ;;  %vm214_vm15 = vcmask 687696  }
  0x8c   :  { %114 = vst.msk [vmem:[#allocation0 + $0x10] sm:$0x1] %vm112_vm0, %v111_v19   ;;  %vm221_vm0 = vcmask 671296  }
  0x8e   :  { %v118_v20 = vpop.permute.xlu0 %117   ;;  %v125_v21 = vpop.permute.xlu1 %124  }
  0x8f   :  { %121 = vst.msk [vmem:[#allocation0 + $0x8] sm:$0x1] %vm119_vm1, %v118_v20   ;;  %vm228_vm1 = vcmask 654896  }
  0x90   :  { %127 = vst.msk [vmem:[#allocation0] sm:$0x1] %vm126_vm2, %v125_v21   ;;  %vm234_vm2 = vcmask 638496  }
  0x92   :  { %v131_v22 = vpop.permute.xlu0 %130   ;;  %v138_v23 = vpop.permute.xlu1 %137  }
  0x93   :  { %134 = vst.msk [vmem:[#allocation0 + $0x20] sm:$0x1] %vm132_vm3, %v131_v22   ;;  %vm241_vm3 = vcmask 622096  }
  0x94   :  { %141 = vst.msk [vmem:[#allocation0 + $0x18] sm:$0x1] %vm139_vm4, %v138_v23   ;;  %vm248_vm4 = vcmask 605696  }
  0x96   :  { %v145_v24 = vpop.permute.xlu0 %144   ;;  %v152_v25 = vpop.permute.xlu1 %151  }
  0x97   :  { %148 = vst.msk [vmem:[#allocation0 + $0x10] sm:$0x1] %vm146_vm5, %v145_v24   ;;  %vm255_vm5 = vcmask 589296  }
  0x98   :  { %155 = vst.msk [vmem:[#allocation0 + $0x8] sm:$0x1] %vm153_vm6, %v152_v25   ;;  %vm262_vm6 = vcmask 572896  }
  0x9a   :  { %v159_v26 = vpop.permute.xlu0 %158   ;;  %v165_v27 = vpop.permute.xlu1 %164  }
  0x9b   :  { %161 = vst.msk [vmem:[#allocation0] sm:$0x1] %vm160_vm7, %v159_v26   ;;  %vm268_vm7 = vcmask 556496  }
  0x9c   :  { %168 = vst.msk [vmem:[#allocation0 + $0x20] sm:$0x1] %vm166_vm8, %v165_v27   ;;  %vm275_vm8 = vcmask 540096  }
  0x9e   :  { %v172_v28 = vpop.permute.xlu0 %171   ;;  %v179_v29 = vpop.permute.xlu1 %178  }
  0x9f   :  { %175 = vst.msk [vmem:[#allocation0 + $0x18] sm:$0x1] %vm173_vm9, %v172_v28   ;;  %vm282_vm9 = vcmask 523696  }
  0xa0   :  { %182 = vst.msk [vmem:[#allocation0 + $0x10] sm:$0x1] %vm180_vm10, %v179_v29   ;;  %vm289_vm10 = vcmask 507296  }
  0xa2   :  { %v186_v30 = vpop.permute.xlu0 %185   ;;  %v193_v31 = vpop.permute.xlu1 %192  }
  0xa3   :  { %189 = vst.msk [vmem:[#allocation0 + $0x8] sm:$0x1] %vm187_vm11, %v186_v30   ;;  %vm296_vm11 = vcmask 490896  }
  0xa4   :  { %195 = vst.msk [vmem:[#allocation0] sm:$0x1] %vm194_vm12, %v193_v31   ;;  %vm302_vm12 = vcmask 474496  }
  0xa6   :  { %v199_v32 = vpop.permute.xlu0 %198   ;;  %v206_v33 = vpop.permute.xlu1 %205  }
  0xa7   :  { %202 = vst.msk [vmem:[#allocation0 + $0x20] sm:$0x1] %vm200_vm13, %v199_v32   ;;  %vm309_vm13 = vcmask 458096  }
  0xa8   :  { %209 = vst.msk [vmem:[#allocation0 + $0x18] sm:$0x1] %vm207_vm14, %v206_v33   ;;  %vm316_vm14 = vcmask 441696  }
  0xaa   :  { %v213_v34 = vpop.permute.xlu0 %212   ;;  %v220_v35 = vpop.permute.xlu1 %219  }
  0xab   :  { %216 = vst.msk [vmem:[#allocation0 + $0x10] sm:$0x1] %vm214_vm15, %v213_v34   ;;  %vm323_vm15 = vcmask 425296  }
  0xac   :  { %223 = vst.msk [vmem:[#allocation0 + $0x8] sm:$0x1] %vm221_vm0, %v220_v35   ;;  %vm330_vm0 = vcmask 408896  }
  0xae   :  { %v227_v36 = vpop.permute.xlu0 %226   ;;  %v233_v37 = vpop.permute.xlu1 %232  }
  0xaf   :  { %229 = vst.msk [vmem:[#allocation0] sm:$0x1] %vm228_vm1, %v227_v36   ;;  %vm336_vm1 = vcmask 392496  }
  0xb0   :  { %236 = vst.msk [vmem:[#allocation0 + $0x20] sm:$0x1] %vm234_vm2, %v233_v37   ;;  %vm343_vm2 = vcmask 376096  }
  0xb2   :  { %v240_v38 = vpop.permute.xlu0 %239   ;;  %v247_v39 = vpop.permute.xlu1 %246  }
  0xb3   :  { %243 = vst.msk [vmem:[#allocation0 + $0x18] sm:$0x1] %vm241_vm3, %v240_v38   ;;  %vm350_vm3 = vcmask 359696  }
  0xb4   :  { %250 = vst.msk [vmem:[#allocation0 + $0x10] sm:$0x1] %vm248_vm4, %v247_v39   ;;  %vm357_vm4 = vcmask 343296  }
  0xb6   :  { %v254_v40 = vpop.permute.xlu0 %253   ;;  %v261_v41 = vpop.permute.xlu1 %260  }
  0xb7   :  { %257 = vst.msk [vmem:[#allocation0 + $0x8] sm:$0x1] %vm255_vm5, %v254_v40   ;;  %vm364_vm5 = vcmask 326896  }
  0xb8   :  { %263 = vst.msk [vmem:[#allocation0] sm:$0x1] %vm262_vm6, %v261_v41   ;;  %vm370_vm6 = vcmask 310496  }
  0xba   :  { %v267_v42 = vpop.permute.xlu0 %266   ;;  %v274_v43 = vpop.permute.xlu1 %273  }
  0xbb   :  { %270 = vst.msk [vmem:[#allocation0 + $0x20] sm:$0x1] %vm268_vm7, %v267_v42   ;;  %vm377_vm7 = vcmask 294096  }
  0xbc   :  { %277 = vst.msk [vmem:[#allocation0 + $0x18] sm:$0x1] %vm275_vm8, %v274_v43   ;;  %vm384_vm8 = vcmask 277696  }
  0xbe   :  { %v281_v44 = vpop.permute.xlu0 %280   ;;  %v288_v45 = vpop.permute.xlu1 %287  }
  0xbf   :  { %284 = vst.msk [vmem:[#allocation0 + $0x10] sm:$0x1] %vm282_vm9, %v281_v44   ;;  %vm391_vm9 = vcmask 261296  }
  0xc0   :  { %291 = vst.msk [vmem:[#allocation0 + $0x8] sm:$0x1] %vm289_vm10, %v288_v45   ;;  %vm398_vm10 = vcmask 244896  }
  0xc2   :  { %v295_v46 = vpop.permute.xlu0 %294   ;;  %v301_v47 = vpop.permute.xlu1 %300  }
  0xc3   :  { %297 = vst.msk [vmem:[#allocation0] sm:$0x1] %vm296_vm11, %v295_v46   ;;  %vm404_vm11 = vcmask 228496  }
  0xc4   :  { %304 = vst.msk [vmem:[#allocation0 + $0x20] sm:$0x1] %vm302_vm12, %v301_v47   ;;  %vm411_vm12 = vcmask 212096  }
  0xc6   :  { %v308_v48 = vpop.permute.xlu0 %307   ;;  %v315_v49 = vpop.permute.xlu1 %314  }
  0xc7   :  { %311 = vst.msk [vmem:[#allocation0 + $0x18] sm:$0x1] %vm309_vm13, %v308_v48   ;;  %vm418_vm13 = vcmask 195696  }
  0xc8   :  { %318 = vst.msk [vmem:[#allocation0 + $0x10] sm:$0x1] %vm316_vm14, %v315_v49   ;;  %vm425_vm14 = vcmask 179296  }
  0xca   :  { %v322_v50 = vpop.permute.xlu0 %321   ;;  %v329_v51 = vpop.permute.xlu1 %328  }
  0xcb   :  { %325 = vst.msk [vmem:[#allocation0 + $0x8] sm:$0x1] %vm323_vm15, %v322_v50   ;;  %vm432_vm15 = vcmask 162896  }
  0xcc   :  { %331 = vst.msk [vmem:[#allocation0] sm:$0x1] %vm330_vm0, %v329_v51   ;;  %vm438_vm0 = vcmask 146496  }
  0xce   :  { %v335_v52 = vpop.permute.xlu0 %334   ;;  %v342_v53 = vpop.permute.xlu1 %341  }
  0xcf   :  { %338 = vst.msk [vmem:[#allocation0 + $0x20] sm:$0x1] %vm336_vm1, %v335_v52   ;;  %vm445_vm1 = vcmask 130096  }
  0xd0   :  { %345 = vst.msk [vmem:[#allocation0 + $0x18] sm:$0x1] %vm343_vm2, %v342_v53   ;;  %vm452_vm2 = vcmask 113696  }
  0xd2   :  { %v349_v54 = vpop.permute.xlu0 %348   ;;  %v356_v55 = vpop.permute.xlu1 %355  }
  0xd3   :  { %352 = vst.msk [vmem:[#allocation0 + $0x10] sm:$0x1] %vm350_vm3, %v349_v54   ;;  %vm459_vm3 = vcmask 97296  }
  0xd4   :  { %359 = vst.msk [vmem:[#allocation0 + $0x8] sm:$0x1] %vm357_vm4, %v356_v55  }
  0xd6   :  { %v363_v56 = vpop.permute.xlu0 %362   ;;  %v369_v57 = vpop.permute.xlu1 %368  }
  0xd7   :  { %365 = vst.msk [vmem:[#allocation0] sm:$0x1] %vm364_vm5, %v363_v56  }
  0xd8   :  { %372 = vst.msk [vmem:[#allocation0 + $0x20] sm:$0x1] %vm370_vm6, %v369_v57  }
  0xda   :  { %v376_v58 = vpop.permute.xlu0 %375   ;;  %v383_v59 = vpop.permute.xlu1 %382  }
  0xdb   :  { %379 = vst.msk [vmem:[#allocation0 + $0x18] sm:$0x1] %vm377_vm7, %v376_v58  }
  0xdc   :  { %386 = vst.msk [vmem:[#allocation0 + $0x10] sm:$0x1] %vm384_vm8, %v383_v59  }
  0xde   :  { %v390_v60 = vpop.permute.xlu0 %389   ;;  %v397_v61 = vpop.permute.xlu1 %396  }
  0xdf   :  { %393 = vst.msk [vmem:[#allocation0 + $0x8] sm:$0x1] %vm391_vm9, %v390_v60  }
  0xe0   :  { %399 = vst.msk [vmem:[#allocation0] sm:$0x1] %vm398_vm10, %v397_v61  }
  0xe2   :  { %v403_v62 = vpop.permute.xlu0 %402   ;;  %v410_v63 = vpop.permute.xlu1 %409  }
  0xe3   :  { %406 = vst.msk [vmem:[#allocation0 + $0x20] sm:$0x1] %vm404_vm11, %v403_v62  }
  0xe4   :  { %413 = vst.msk [vmem:[#allocation0 + $0x18] sm:$0x1] %vm411_vm12, %v410_v63  }
  0xe6   :  { %v417_v0 = vpop.permute.xlu0 %416   ;;  %v424_v1 = vpop.permute.xlu1 %423  }
  0xe7   :  { %420 = vst.msk [vmem:[#allocation0 + $0x10] sm:$0x1] %vm418_vm13, %v417_v0  }
  0xe8   :  { %427 = vst.msk [vmem:[#allocation0 + $0x8] sm:$0x1] %vm425_vm14, %v424_v1  }
  0xea   :  { %v431_v2 = vpop.permute.xlu0 %430   ;;  %v437_v3 = vpop.permute.xlu1 %436  }
  0xeb   :  { %433 = vst.msk [vmem:[#allocation0] sm:$0x1] %vm432_vm15, %v431_v2  }
  0xec   :  { %440 = vst.msk [vmem:[#allocation0 + $0x20] sm:$0x1] %vm438_vm0, %v437_v3  }
  0xee   :  { %v444_v4 = vpop.permute.xlu0 %443   ;;  %v451_v5 = vpop.permute.xlu1 %450  }
  0xef   :  { %447 = vst.msk [vmem:[#allocation0 + $0x18] sm:$0x1] %vm445_vm1, %v444_v4  }
  0xf0   :  { %454 = vst.msk [vmem:[#allocation0 + $0x10] sm:$0x1] %vm452_vm2, %v451_v5  }
  0xf2   :  { %v465_v6 = vld [vmem:[#allocation0] sm:$0x1]  ;;  %v458_v7 = vpop.permute.xlu0 %457  }
  0xf3   :  { %467 = vst [vmem:[%s929_s1] sm:$0x1] %v465_v6  ;;  %v486_v8 = vld [vmem:[#allocation0 + $0x20] sm:$0x1]  ;;  %461 = vst.msk [vmem:[#allocation0 + $0x8] sm:$0x1] %vm459_vm3, %v458_v7  }
  0xf4   :  { %564 = vst [vmem:[%s929_s1 + $0x4] sm:$0x1] %v486_v8 }
  0xf6   :  { %v480_v9 = vld [vmem:[#allocation0 + $0x18] sm:$0x1] }
  0xf7   :  { %563 = vst [vmem:[%s929_s1 + $0x3] sm:$0x1] %v480_v9  ;;  %v474_v10 = vld [vmem:[#allocation0 + $0x10] sm:$0x1] }
  0xf8   :  { %562 = vst [vmem:[%s929_s1 + $0x2] sm:$0x1] %v474_v10 }
  0xfa   :  { %v469_v11 = vld [vmem:[#allocation0 + $0x8] sm:$0x1] }
  0xfb   :  { %561 = vst [vmem:[%s929_s1 + $0x1] sm:$0x1] %v469_v11 }

// kernel: example_model_forward.1
= control target key start
LH: loop header
LB: loop body
LE: loop exit
PB: predicated region body
PF: predicated region fallthrough
CT: control target
= control target key end

     0   :  { %v18_v0 = vlaneseq  ;;  %s105_s1 = inlined_call_operand.vmem [shape: f32[1,640], index: 1, kind: input, shape index: {}]   ;;  %s106_s0 = inlined_call_operand.vmem [shape: f32[8,640], index: 0, kind: input, shape index: {}, may-alias: {0,2}]   ;;  %s107_s2 = inlined_call_operand.vmem [shape: f32[8,640], index: 2, kind: output, shape index: {}, may-alias: {0,2}]  }
   0x1   :  { %v16_v2 = vld [vmem:[%s105_s1] sm:$0x1f]  ;;  %v12_v8 = vld [vmem:[%s106_s0 + $0x8] sm:$0xff]  ;;  %v13_v9 = vld [vmem:[%s106_s0 + $0x10] sm:$0xff] }
   0x2   :  { %v19_v1 = vshrl.u32 %v18_v0, 7  ;;  %v11_v3 = vld [vmem:[%s106_s0] sm:$0xff]  ;;  %v14_v10 = vld [vmem:[%s106_s0 + $0x18] sm:$0xff] }
   0x3   :  { %v15_v16 = vld [vmem:[%s106_s0 + $0x20] sm:$0xff] }
   0x4   :  { %v20_v4 = vsub.s32 0, %v19_v1  ;;  %v24_v5 = vsub.s32 1, %v19_v1  ;;  %v28_v6 = vsub.s32 2, %v19_v1  ;;  %v32_v7 = vsub.s32 3, %v19_v1 }
   0x5   :  { %v36_v11 = vsub.s32 4, %v19_v1 }
   0x6   :  { %v21_v12 = vrot.slane %v16_v2, %v20_v4  ;;  %v25_v13 = vrot.slane %v16_v2, %v24_v5  ;;  %v29_v14 = vrot.slane %v16_v2, %v28_v6  ;;  %v33_v15 = vrot.slane %v16_v2, %v32_v7 }
   0x7   :  { %v37_v17 = vrot.slane %v16_v2, %v36_v11 }
   0x8   :  { %v43_v18 = vadd.f32 %v21_v12, %v11_v3  ;;  %v44_v19 = vadd.f32 %v25_v13, %v12_v8  ;;  %v45_v20 = vadd.f32 %v29_v14, %v13_v9  ;;  %v46_v21 = vadd.f32 %v33_v15, %v14_v10 }
   0x9   :  { %v47_v22 = vadd.f32 %v37_v17, %v15_v16 }
   0xa   :  { %48 = vst [vmem:[%s107_s2] sm:$0xff] %v43_v18  ;;  %49 = vst [vmem:[%s107_s2 + $0x8] sm:$0xff] %v44_v19 }
   0xb   :  { %50 = vst [vmem:[%s107_s2 + $0x10] sm:$0xff] %v45_v20  ;;  %51 = vst [vmem:[%s107_s2 + $0x18] sm:$0xff] %v46_v21 }
   0xc   :  { %52 = vst [vmem:[%s107_s2 + $0x20] sm:$0xff] %v47_v22 }

</bundles_post_ra>
